<compile_context>
chip_gen: v6e
topology: v6e:2x2x1
jax: 0.10.0
libtpu: 0.0.40
codegen_flags: <defaults>
</compile_context>

<pallas_src>
import functools
from collections import namedtuple

import jax
import jax.numpy as jnp
from jax.experimental import pallas as pl
from jax.experimental.pallas import tpu as pltpu


def _round_up(x, m):
    return ((x + m - 1) // m) * m


# Per-layer static geometry baked into the kernel:
#   wp     : padded input width of this layer (= row pitch of its VMEM scratch)
#   w_ext  : width of one output row as produced by this layer's dot
#            (wout for layer 0; wp for in-VMEM layers, forced by the
#             contiguous-tap trick -> the extra columns are discarded)
#   m_ext  : number of dot rows (= hout * w_ext)
#   nxt_*  : padded-input geometry of the NEXT layer (None for the last layer)
_Layer = namedtuple("_Layer", "wp hout wout w_ext m_ext relu nxt_wp nxt_pad")


def _encoder_kernel(*refs, cfgs, kh, kw):
    """Runs every conv layer of the encoder for one image.

    refs = [patches0, w0, b0, w1, b1, ..., o_ref, scratch_1, ..., scratch_{L-1}]

    Layer 0 consumes pre-packed im2col patches (M0, kh*kw*Cin0) built once by
    the wrapper.  Every later layer's input lives in a VMEM scratch holding the
    spatially zero-padded activation flattened to (Hp*Wp + kw-1, C); because the
    row pitch equals the padded width, tap (dy,dx) is the contiguous slice
    [dy*Wp+dx : dy*Wp+dx + Hout*Wp], so the layer is one tap-packed MXU dot.
    """
    n_layers = len(cfgs)
    o_ref = refs[1 + 2 * n_layers]
    scratch_refs = refs[2 + 2 * n_layers:]

    x = refs[0][0]                                         # (m_ext0, kh*kw*Cin0)
    for l, cfg in enumerate(cfgs):
        w_ref, b_ref = refs[1 + 2 * l], refs[2 + 2 * l]
        if l > 0:
            a_ref = scratch_refs[l - 1]
            taps = [a_ref[pl.ds(dy * cfg.wp + dx, cfg.m_ext), :]
                    for dy in range(kh) for dx in range(kw)]
            x = jnp.concatenate(taps, axis=-1)             # (m_ext, kh*kw*Cin)

        # One tap-packed MXU dot per layer; bias / ReLU fused on the result
        # (no zero-init accumulator, no separate VPU pass over zeros).
        y = jnp.dot(x, w_ref[...], preferred_element_type=jnp.float32)
        y = y + b_ref[...]
        if cfg.relu:
            y = jnp.maximum(y, 0.0)

        if l == n_layers - 1:
            # Extension columns (if any) are stripped by the wrapper.
            o_ref[0] = y.astype(o_ref.dtype)
        else:
            # Scatter the valid wout columns of each output row into the next
            # layer's padded+flattened scratch; pad rows/cols stay zero.
            a_next = scratch_refs[l]
            a_next[...] = jnp.zeros_like(a_next)
            p, nwp = cfg.nxt_pad, cfg.nxt_wp
            for oy in range(cfg.hout):
                a_next[pl.ds((oy + p) * nwp + p, cfg.wout), :] = (
                    y[oy * cfg.w_ext:oy * cfg.w_ext + cfg.wout, :])


def encoder_forward(params, strides, x_nchw, *, padding=1):
    """Forward pass of the PyTorch Encoder (Conv+ReLU chain, last conv linear).

    NCHW in / NCHW out like the nn.Module; a single fused pallas_call runs all
    layers with grid = (batch,) marked "parallel".
    """
    n, cin0, h, w = x_nchw.shape
    n_layers = len(params)
    assert len(strides) == n_layers
    assert params[0][0].shape[1] == cin0
    kh, kw = params[0][0].shape[2], params[0][0].shape[3]

    # ----------------------- static per-layer geometry -----------------------
    cfgs, scratch_shapes = [], []
    hin, win = h, w
    for l in range(n_layers):
        cout = params[l][0].shape[0]
        s = strides[l]
        if l > 0 and s != 1:
            # TODO(synk): the fused in-VMEM path only implements stride 1 for
            # layers after the first (contiguous-tap trick); extend with
            # strided pl.ds slices if such configs are ever needed.
            raise NotImplementedError("stride > 1 only supported on layer 0")
        hp, wp = hin + 2 * padding, win + 2 * padding
        hout, wout = (hp - kh) // s + 1, (wp - kw) // s + 1
        last = l == n_layers - 1
        nxt_hp = None if last else hout + 2 * padding
        nxt_wp = None if last else wout + 2 * padding
        w_ext = wout if l == 0 else wp
        cfgs.append(_Layer(wp=wp, hout=hout, wout=wout, w_ext=w_ext,
                           m_ext=hout * w_ext, relu=not last,
                           nxt_wp=nxt_wp, nxt_pad=None if last else padding))
        if not last:
            rows = _round_up(nxt_hp * nxt_wp + (kw - 1), 8)
            scratch_shapes.append(pltpu.VMEM((rows, cout), jnp.float32))
        hin, win = hout, wout
    cfg0, cfgL = cfgs[0], cfgs[-1]
    cout_last = params[-1][0].shape[0]

    # ------- layer-0 patches: tap-packed im2col built once in XLA (HBM) ------
    # K carries only real channels x taps (27 here) -> no 128-channel blow-up.
    x_nhwc = jnp.transpose(x_nchw, (0, 2, 3, 1))
    xp = jnp.pad(x_nhwc,
                 ((0, 0), (padding, padding), (padding, padding), (0, 0)))
    s0 = strides[0]
    pieces = [xp[:, dy:dy + (cfg0.hout - 1) * s0 + 1:s0,
                 dx:dx + (cfg0.wout - 1) * s0 + 1:s0, :]
              for dy in range(kh) for dx in range(kw)]
    k0 = kh * kw * cin0
    patches = jnp.concatenate(pieces, axis=-1)       # (N, Hout, Wout, k0)
    patches = patches.reshape(n, cfg0.m_ext, k0)

    # --------------- packed per-tap weights / biases (real Cout) -------------
    ops = [patches]
    in_specs = [pl.BlockSpec((1, cfg0.m_ext, k0), lambda b: (b, 0, 0))]
    for wgt, bias in params:
        cout, cin_l = wgt.shape[0], wgt.shape[1]
        kl = kh * kw * cin_l
        ops.append(jnp.transpose(wgt, (2, 3, 1, 0)).reshape(kl, cout))
        ops.append(bias.reshape(1, cout))
        in_specs.append(pl.BlockSpec((kl, cout), lambda b: (0, 0)))
        in_specs.append(pl.BlockSpec((1, cout), lambda b: (0, 0)))

    out_shape = jax.ShapeDtypeStruct((n, cfgL.m_ext, cout_last), jnp.float32)
    out_spec = pl.BlockSpec((1, cfgL.m_ext, cout_last), lambda b: (b, 0, 0))

    flops = sum(2 * n * c.m_ext * (kh * kw * p[0].shape[1]) * p[0].shape[0]
                for c, p in zip(cfgs, params))
    bytes_accessed = 4 * (patches.size
                          + sum(p[0].size + p[1].size for p in params)
                          + n * cfgL.m_ext * cout_last)

    kernel = functools.partial(_encoder_kernel, cfgs=tuple(cfgs), kh=kh, kw=kw)

    out = pl.pallas_call(
        kernel,
        out_shape=out_shape,
        grid_spec=pltpu.PrefetchScalarGridSpec(
            num_scalar_prefetch=0,
            grid=(n,),
            in_specs=in_specs,
            out_specs=out_spec,
            scratch_shapes=scratch_shapes),
        compiler_params=pltpu.CompilerParams(
            dimension_semantics=("parallel",),
            vmem_limit_bytes=32 * 1024 * 1024),
        cost_estimate=pl.CostEstimate(flops=flops, transcendentals=0,
                                      bytes_accessed=bytes_accessed),
    )(*ops)

    # Strip the horizontal-extension columns of the last layer, back to NCHW.
    y = out.reshape(n, cfgL.hout, cfgL.w_ext, cout_last)[:, :, :cfgL.wout, :]
    return jnp.transpose(y, (0, 3, 1, 2))


# ------------------------------ Encoder params -------------------------------
def init_encoder_params(key, dims, kernel_size=3):
    """Deterministic Conv2d params mirroring nn.Conv2d shapes/init bounds."""
    params = []
    prev_dim = 3
    for d in dims:
        key, kw_, kb_ = jax.random.split(key, 3)
        fan_in = prev_dim * kernel_size * kernel_size
        bound = 1.0 / jnp.sqrt(fan_in)
        w = jax.random.uniform(kw_, (d, prev_dim, kernel_size, kernel_size),
                               minval=-bound, maxval=bound, dtype=jnp.float32)
        b = jax.random.uniform(kb_, (d,), minval=-bound, maxval=bound,
                               dtype=jnp.float32)
        params.append((w, b))
        prev_dim = d
    return params


# ---------------------------- reference (JAX lax) -----------------------------
def _ref_conv(x, w, b, stride, padding, relu):
    y = jax.lax.conv_general_dilated(
        x, w, window_strides=(stride, stride),
        padding=[(padding, padding), (padding, padding)],
        dimension_numbers=("NCHW", "OIHW", "NCHW"))
    y = y + b.reshape(1, -1, 1, 1)
    return jnp.maximum(y, 0.0) if relu else y


def _ref_encoder(params, strides, x, padding=1):
    for i, (w, b) in enumerate(params):
        x = _ref_conv(x, w, b, strides[i], padding, relu=(i != len(params) - 1))
    return x


if __name__ == "__main__":
    # Encoder(dims=[8, 16], strides=[2, 1], kernel_size=3, padding=1)
    dims = [8, 16]
    strides = [2, 1]
    kernel_size = 3
    padding = 1

    key = jax.random.PRNGKey(0)
    key, xkey = jax.random.split(key)
    x = jax.random.normal(xkey, (2, 3, 16, 16), dtype=jnp.float32)   # NCHW

    params = init_encoder_params(key, dims, kernel_size)

    fwd = jax.jit(lambda p, xx: encoder_forward(p, strides, xx, padding=padding))
    out = jax.block_until_ready(fwd(params, x))

    ref = jax.block_until_ready(_ref_encoder(params, strides, x, padding=padding))
    assert out.shape == (2, dims[-1], 8, 8), out.shape
    assert jnp.allclose(out, ref, atol=1e-4, rtol=1e-4), \
        float(jnp.max(jnp.abs(out - ref)))

    print("KERNEL_OK")
</pallas_src>

<mosaic_0001>
module attributes {stable_mosaic.version = 11 : i64} {
  func.func @_encoder_kernel(%arg0: i32, %arg1: memref<1x64x27xf32, #tpu.memory_space<vmem>>, %arg2: memref<27x8xf32, #tpu.memory_space<vmem>>, %arg3: memref<1x8xf32, #tpu.memory_space<vmem>>, %arg4: memref<72x16xf32, #tpu.memory_space<vmem>>, %arg5: memref<1x16xf32, #tpu.memory_space<vmem>>, %arg6: memref<1x80x16xf32, #tpu.memory_space<vmem>>, %arg7: memref<104x8xf32, #tpu.memory_space<vmem>>) attributes {dimension_semantics = [#tpu.dimension_semantics<parallel>], iteration_bounds = array<i64: 2>, scalar_prefetch = 0 : i64, scratch_operands = 1 : i64, tpu.core_type = #tpu.core_type<tc>, window_params = [{transform_indices = @transform_0, window_bounds = array<i64: 1, 64, 27>}, {pipeline_mode = #tpu.pipeline_mode<synchronous>, transform_indices = @transform_1, window_bounds = array<i64: 27, 8>}, {pipeline_mode = #tpu.pipeline_mode<synchronous>, transform_indices = @transform_2, window_bounds = array<i64: 1, 8>}, {pipeline_mode = #tpu.pipeline_mode<synchronous>, transform_indices = @transform_3, window_bounds = array<i64: 72, 16>}, {pipeline_mode = #tpu.pipeline_mode<synchronous>, transform_indices = @transform_4, window_bounds = array<i64: 1, 16>}, {transform_indices = @transform_5, window_bounds = array<i64: 1, 80, 16>}]} {
    %c0 = arith.constant 0 : index
    %c0_0 = arith.constant 0 : index
    %c0_1 = arith.constant 0 : index
    %0 = vector.load %arg1[%c0, %c0_0, %c0_1] : memref<1x64x27xf32, #tpu.memory_space<vmem>>, vector<1x64x27xf32>
    %1 = vector.shape_cast %0 : vector<1x64x27xf32> to vector<64x27xf32>
    %c0_2 = arith.constant 0 : index
    %c0_3 = arith.constant 0 : index
    %2 = vector.load %arg2[%c0_2, %c0_3] : memref<27x8xf32, #tpu.memory_space<vmem>>, vector<27x8xf32>
    %cst = arith.constant dense<0.000000e+00> : vector<64x8xf32>
    %3 = tpu.matmul %1, %2, %cst {dimension_numbers = #tpu.dot_dimension_numbers<[1], [0], [0], [1], [0, 0, 1, 1], [], []>} : vector<64x27xf32>, vector<27x8xf32>, vector<64x8xf32> -> vector<64x8xf32>
    %c0_4 = arith.constant 0 : index
    %c0_5 = arith.constant 0 : index
    %4 = vector.load %arg3[%c0_4, %c0_5] : memref<1x8xf32, #tpu.memory_space<vmem>>, vector<1x8xf32>
    %5 = vector.broadcast %4 : vector<1x8xf32> to vector<64x8xf32>
    %6 = arith.addf %3, %5 : vector<64x8xf32>
    %cst_6 = arith.constant 0.000000e+00 : f32
    %7 = vector.broadcast %cst_6 : f32 to vector<64x8xf32>
    %8 = arith.maximumf %6, %7 : vector<64x8xf32>
    %cst_7 = arith.constant 0.000000e+00 : f32
    %9 = vector.broadcast %cst_7 : f32 to vector<104x8xf32>
    %c0_8 = arith.constant 0 : index
    %c0_9 = arith.constant 0 : index
    %10 = vector.load %arg7[%c0_8, %c0_9] : memref<104x8xf32, #tpu.memory_space<vmem>>, vector<104x8xf32>
    tpu.vector_store %arg7[%c0_8, %c0_9], %9 {strides = array<i32>} : memref<104x8xf32, #tpu.memory_space<vmem>>, vector<104x8xf32>,
    %11 = vector.extract_strided_slice %8 {offsets = [0, 0], sizes = [8, 8], strides = [1, 1]} : vector<64x8xf32> to vector<8x8xf32>
    %c11 = arith.constant 11 : index
    %c0_10 = arith.constant 0 : index
    %12 = vector.load %arg7[%c11, %c0_10] : memref<104x8xf32, #tpu.memory_space<vmem>>, vector<8x8xf32>
    tpu.vector_store %arg7[%c11, %c0_10], %11 {strides = array<i32>} : memref<104x8xf32, #tpu.memory_space<vmem>>, vector<8x8xf32>,
    %13 = vector.extract_strided_slice %8 {offsets = [8, 0], sizes = [8, 8], strides = [1, 1]} : vector<64x8xf32> to vector<8x8xf32>
    %c21 = arith.constant 21 : index
    %c0_11 = arith.constant 0 : index
    %14 = vector.load %arg7[%c21, %c0_11] : memref<104x8xf32, #tpu.memory_space<vmem>>, vector<8x8xf32>
    tpu.vector_store %arg7[%c21, %c0_11], %13 {strides = array<i32>} : memref<104x8xf32, #tpu.memory_space<vmem>>, vector<8x8xf32>,
    %15 = vector.extract_strided_slice %8 {offsets = [16, 0], sizes = [8, 8], strides = [1, 1]} : vector<64x8xf32> to vector<8x8xf32>
    %c31 = arith.constant 31 : index
    %c0_12 = arith.constant 0 : index
    %16 = vector.load %arg7[%c31, %c0_12] : memref<104x8xf32, #tpu.memory_space<vmem>>, vector<8x8xf32>
    tpu.vector_store %arg7[%c31, %c0_12], %15 {strides = array<i32>} : memref<104x8xf32, #tpu.memory_space<vmem>>, vector<8x8xf32>,
    %17 = vector.extract_strided_slice %8 {offsets = [24, 0], sizes = [8, 8], strides = [1, 1]} : vector<64x8xf32> to vector<8x8xf32>
    %c41 = arith.constant 41 : index
    %c0_13 = arith.constant 0 : index
    %18 = vector.load %arg7[%c41, %c0_13] : memref<104x8xf32, #tpu.memory_space<vmem>>, vector<8x8xf32>
    tpu.vector_store %arg7[%c41, %c0_13], %17 {strides = array<i32>} : memref<104x8xf32, #tpu.memory_space<vmem>>, vector<8x8xf32>,
    %19 = vector.extract_strided_slice %8 {offsets = [32, 0], sizes = [8, 8], strides = [1, 1]} : vector<64x8xf32> to vector<8x8xf32>
    %c51 = arith.constant 51 : index
    %c0_14 = arith.constant 0 : index
    %20 = vector.load %arg7[%c51, %c0_14] : memref<104x8xf32, #tpu.memory_space<vmem>>, vector<8x8xf32>
    tpu.vector_store %arg7[%c51, %c0_14], %19 {strides = array<i32>} : memref<104x8xf32, #tpu.memory_space<vmem>>, vector<8x8xf32>,
    %21 = vector.extract_strided_slice %8 {offsets = [40, 0], sizes = [8, 8], strides = [1, 1]} : vector<64x8xf32> to vector<8x8xf32>
    %c61 = arith.constant 61 : index
    %c0_15 = arith.constant 0 : index
    %22 = vector.load %arg7[%c61, %c0_15] : memref<104x8xf32, #tpu.memory_space<vmem>>, vector<8x8xf32>
    tpu.vector_store %arg7[%c61, %c0_15], %21 {strides = array<i32>} : memref<104x8xf32, #tpu.memory_space<vmem>>, vector<8x8xf32>,
    %23 = vector.extract_strided_slice %8 {offsets = [48, 0], sizes = [8, 8], strides = [1, 1]} : vector<64x8xf32> to vector<8x8xf32>
    %c71 = arith.constant 71 : index
    %c0_16 = arith.constant 0 : index
    %24 = vector.load %arg7[%c71, %c0_16] : memref<104x8xf32, #tpu.memory_space<vmem>>, vector<8x8xf32>
    tpu.vector_store %arg7[%c71, %c0_16], %23 {strides = array<i32>} : memref<104x8xf32, #tpu.memory_space<vmem>>, vector<8x8xf32>,
    %25 = vector.extract_strided_slice %8 {offsets = [56, 0], sizes = [8, 8], strides = [1, 1]} : vector<64x8xf32> to vector<8x8xf32>
    %c81 = arith.constant 81 : index
    %c0_17 = arith.constant 0 : index
    %26 = vector.load %arg7[%c81, %c0_17] : memref<104x8xf32, #tpu.memory_space<vmem>>, vector<8x8xf32>
    tpu.vector_store %arg7[%c81, %c0_17], %25 {strides = array<i32>} : memref<104x8xf32, #tpu.memory_space<vmem>>, vector<8x8xf32>,
    %c0_18 = arith.constant 0 : index
    %c0_19 = arith.constant 0 : index
    %27 = vector.load %arg7[%c0_18, %c0_19] : memref<104x8xf32, #tpu.memory_space<vmem>>, vector<80x8xf32>
    %c1 = arith.constant 1 : index
    %c0_20 = arith.constant 0 : index
    %28 = vector.load %arg7[%c1, %c0_20] : memref<104x8xf32, #tpu.memory_space<vmem>>, vector<80x8xf32>
    %c2 = arith.constant 2 : index
    %c0_21 = arith.constant 0 : index
    %29 = vector.load %arg7[%c2, %c0_21] : memref<104x8xf32, #tpu.memory_space<vmem>>, vector<80x8xf32>
    %c10 = arith.constant 10 : index
    %c0_22 = arith.constant 0 : index
    %30 = vector.load %arg7[%c10, %c0_22] : memref<104x8xf32, #tpu.memory_space<vmem>>, vector<80x8xf32>
    %c11_23 = arith.constant 11 : index
    %c0_24 = arith.constant 0 : index
    %31 = vector.load %arg7[%c11_23, %c0_24] : memref<104x8xf32, #tpu.memory_space<vmem>>, vector<80x8xf32>
    %c12 = arith.constant 12 : index
    %c0_25 = arith.constant 0 : index
    %32 = vector.load %arg7[%c12, %c0_25] : memref<104x8xf32, #tpu.memory_space<vmem>>, vector<80x8xf32>
    %c20 = arith.constant 20 : index
    %c0_26 = arith.constant 0 : index
    %33 = vector.load %arg7[%c20, %c0_26] : memref<104x8xf32, #tpu.memory_space<vmem>>, vector<80x8xf32>
    %c21_27 = arith.constant 21 : index
    %c0_28 = arith.constant 0 : index
    %34 = vector.load %arg7[%c21_27, %c0_28] : memref<104x8xf32, #tpu.memory_space<vmem>>, vector<80x8xf32>
    %c22 = arith.constant 22 : index
    %c0_29 = arith.constant 0 : index
    %35 = vector.load %arg7[%c22, %c0_29] : memref<104x8xf32, #tpu.memory_space<vmem>>, vector<80x8xf32>
    %36 = tpu.concatenate %27, %28, %29, %30, %31, %32, %33, %34, %35 in 1 : vector<80x8xf32>, vector<80x8xf32>, vector<80x8xf32>, vector<80x8xf32>, vector<80x8xf32>, vector<80x8xf32>, vector<80x8xf32>, vector<80x8xf32>, vector<80x8xf32> -> vector<80x72xf32>
    %c0_30 = arith.constant 0 : index
    %c0_31 = arith.constant 0 : index
    %37 = vector.load %arg4[%c0_30, %c0_31] : memref<72x16xf32, #tpu.memory_space<vmem>>, vector<72x16xf32>
    %cst_32 = arith.constant dense<0.000000e+00> : vector<80x16xf32>
    %38 = tpu.matmul %36, %37, %cst_32 {dimension_numbers = #tpu.dot_dimension_numbers<[1], [0], [0], [1], [0, 0, 1, 1], [], []>} : vector<80x72xf32>, vector<72x16xf32>, vector<80x16xf32> -> vector<80x16xf32>
    %c0_33 = arith.constant 0 : index
    %c0_34 = arith.constant 0 : index
    %39 = vector.load %arg5[%c0_33, %c0_34] : memref<1x16xf32, #tpu.memory_space<vmem>>, vector<1x16xf32>
    %40 = vector.broadcast %39 : vector<1x16xf32> to vector<80x16xf32>
    %41 = arith.addf %38, %40 : vector<80x16xf32>
    %c0_35 = arith.constant 0 : index
    %c0_36 = arith.constant 0 : index
    %c0_37 = arith.constant 0 : index
    %42 = vector.load %arg6[%c0_35, %c0_36, %c0_37] : memref<1x80x16xf32, #tpu.memory_space<vmem>>, vector<1x80x16xf32>
    %43 = vector.shape_cast %42 : vector<1x80x16xf32> to vector<80x16xf32>
    %44 = vector.shape_cast %41 : vector<80x16xf32> to vector<1x80x16xf32>
    tpu.vector_store %arg6[%c0_35, %c0_36, %c0_37], %44 {strides = array<i32>} : memref<1x80x16xf32, #tpu.memory_space<vmem>>, vector<1x80x16xf32>,
    return
  }
  func.func @transform_0(%arg0: i32) -> (i32, i32, i32) {
    %c0_i32 = arith.constant 0 : i32
    %c0_i32_0 = arith.constant 0 : i32
    %c0_i32_1 = arith.constant 0 : i32
    return %arg0, %c0_i32, %c0_i32_0 : i32, i32, i32
  }
  func.func @transform_1(%arg0: i32) -> (i32, i32) {
    %c0_i32 = arith.constant 0 : i32
    %c0_i32_0 = arith.constant 0 : i32
    %c0_i32_1 = arith.constant 0 : i32
    return %c0_i32, %c0_i32_0 : i32, i32
  }
  func.func @transform_2(%arg0: i32) -> (i32, i32) {
    %c0_i32 = arith.constant 0 : i32
    %c0_i32_0 = arith.constant 0 : i32
    %c0_i32_1 = arith.constant 0 : i32
    return %c0_i32, %c0_i32_0 : i32, i32
  }
  func.func @transform_3(%arg0: i32) -> (i32, i32) {
    %c0_i32 = arith.constant 0 : i32
    %c0_i32_0 = arith.constant 0 : i32
    %c0_i32_1 = arith.constant 0 : i32
    return %c0_i32, %c0_i32_0 : i32, i32
  }
  func.func @transform_4(%arg0: i32) -> (i32, i32) {
    %c0_i32 = arith.constant 0 : i32
    %c0_i32_0 = arith.constant 0 : i32
    %c0_i32_1 = arith.constant 0 : i32
    return %c0_i32, %c0_i32_0 : i32, i32
  }
  func.func @transform_5(%arg0: i32) -> (i32, i32, i32) {
    %c0_i32 = arith.constant 0 : i32
    %c0_i32_0 = arith.constant 0 : i32
    %c0_i32_1 = arith.constant 0 : i32
    return %arg0, %c0_i32, %c0_i32_0 : i32, i32, i32
  }
}

</mosaic_0001>

<bundles_post_ra>
// kernel: _lambda_.1
= control target key start
LH: loop header
LB: loop body
LE: loop exit
PB: predicated region body
PF: predicated region fallthrough
CT: control target
= control target key end

     0   :  { %s1295_s18 = smov 0   ;;  %s1591_s0 = inlined_call_operand.vmem [shape: f32[2,64,27], index: 0, kind: input, shape index: {}]   ;;  %s1592_s1 = inlined_call_operand.vmem [shape: f32[27,8], index: 1, kind: input, shape index: {}]   ;;  %s1593_s2 = inlined_call_operand.vmem [shape: f32[1,8], index: 2, kind: input, shape index: {}]   ;;  %s1594_s3 = inlined_call_operand.vmem [shape: f32[72,16], index: 3, kind: input, shape index: {}]   ;;  %s1595_s4 = inlined_call_operand.vmem [shape: f32[1,16], index: 4, kind: input, shape index: {}]   ;;  %s1596_s5 = inlined_call_operand.vmem [shape: f32[2,80,16], index: 5, kind: output, shape index: {}]  }
   0x1 LB: > { %s1096_s19 = sadd.s32 4294967295, %s1254_s18   ;;  %p1100_p0 = scmp.ge.s32.totalorder %s1254_s18, 1  ;;  %s1254_s18 = sphi %s1295_s18, %s15_s18  }
   0x2   : > { %p187_p1 = scmp.lt.s32.totalorder %s1254_s18, 3 }
   0x4   : > { %p188_p2 = pnand %p1100_p0, %p187_p1 }
   0x5   : > { %p215_p3 = scmp.lt.s32.totalorder (!%p188_p2), %s1096_s19, 1  ;;  %s1257_s7 = smov (!%p188_p2), 16  }
   0x6   : > { %191 = sbr.rel (%p188_p2) target bundleno = 691 (0x2b3), region = 40  ;;  %s1258_s8 = smov (!%p188_p2), 48  }
   0x7   : > { %s1259_s9 = smov (!%p188_p2), 8   ;;  %s1260_s10 = smov (!%p188_p2), 56  }
   0x8   : > { %s1261_s13 = smov (!%p188_p2), 40   ;;  %s1262_s14 = smov (!%p188_p2), 32  }
   0x9   : > { %s1263_s15 = smov (!%p188_p2), 64   ;;  %s1264_s16 = smov (!%p188_p2), 24  }
   0xb   : > { %v236_v0 = vld [vmem:[%s1592_s1 + $0x18] sm:$0x7]  ;;  %vm269_vm0 = vcmask 1042432   ;;  %v235_v1 = vld [vmem:[%s1592_s1 + $0x10] sm:$0xff]  ;;  %v234_v2 = vld [vmem:[%s1592_s1 + $0x8] sm:$0xff]  ;;  %s1598_s19 = smov (!%p215_p3, %s1096_s19), 1 }
   0xc   : > { %1159 = vmatprep.subr.msk.mxu0 %vm269_vm0, %v236_v0  ;;  %v233_v3 = vld [vmem:[%s1592_s1] sm:$0xff]  ;;  %s1127_s28 = sshll.u32 %s1598_s19, 6  ;;  %vm244_vm1 = vcmask 220160   ;;  %vm386_vm2 = vcmask 64512   ;;  %v1256_v12 = vmov 0.0   ;;  %vm792_vm3 = vcmask 130048  }
   0xd   : > { %1160 = vmatpush3.msk.msra.mxu0 %vm269_vm0, %v236_v0  ;;  %s219_s6 = scalar_lea.vmem %s1591_s0, %s1127_s28  ;;  %389 = vst.msk [vmem:[#allocation2 + $0x10] sm:$0xff] %vm386_vm2, %v1256_v12  ;;  %390 = vst.msk [vmem:[#allocation2 + $0x18] sm:$0xff] %vm386_vm2, %v1256_v12  ;;  %v1104_v17 = vld [vmem:[%s1593_s2] ss:$0 sm:$0xff]  ;;  %vm814_vm4 = vcmask 261120   ;;  %vm803_vm5 = vcmask 195584  }
   0xe   : > { %1161 = vmatprep.subr.mxu0 %v235_v1  ;;  %v225_v4 = vld [vmem:[%s219_s6] sm:$0xff]  ;;  %v226_v5 = vld [vmem:[%s219_s6 + $0x8] sm:$0xff]  ;;  %v227_v6 = vld [vmem:[%s219_s6 + $0x10] sm:$0xff]  ;;  %387 = vst.msk [vmem:[#allocation2] sm:$0xff] %vm386_vm2, %v1256_v12  ;;  %vm825_vm6 = vcmask 326656   ;;  %vm836_vm7 = vcmask 392192  }
   0xf   : > { %1162 = vmatpush3.msra.mxu0 %v235_v1  ;;  %1167 = vmatprep.mubr.msk.f32.mxu0 %vm244_vm1, %v225_v4  ;;  %v228_v7 = vld [vmem:[%s219_s6 + $0x18] sm:$0xff]  ;;  %v229_v8 = vld [vmem:[%s219_s6 + $0x20] sm:$0xff]  ;;  %v230_v9 = vld [vmem:[%s219_s6 + $0x28] sm:$0xff]  ;;  %388 = vst.msk [vmem:[#allocation2 + $0x8] sm:$0xff] %vm386_vm2, %v1256_v12  ;;  %vm847_vm8 = vcmask 457728   ;;  %vm858_vm9 = vcmask 523264  }
  0x10   : > { %1163 = vmatprep.subr.mxu0 %v234_v2  ;;  %v231_v10 = vld [vmem:[%s219_s6 + $0x30] sm:$0xff]  ;;  %v232_v11 = vld [vmem:[%s219_s6 + $0x38] sm:$0xff]  ;;  %391 = vst.msk [vmem:[#allocation2 + $0x20] sm:$0xff] %vm386_vm2, %v1256_v12  ;;  %392 = vst.msk [vmem:[#allocation2 + $0x28] sm:$0xff] %vm386_vm2, %v1256_v12  ;;  %vm885_vm10 = vcmask 588800  }
  0x11   : > { %1164 = vmatpush3.msra.mxu0 %v234_v2  ;;  %393 = vst.msk [vmem:[#allocation2 + $0x30] sm:$0xff] %vm386_vm2, %v1256_v12  ;;  %394 = vst.msk [vmem:[#allocation2 + $0x38] sm:$0xff] %vm386_vm2, %v1256_v12  ;;  %v877_v0 = vld [vmem:[%s1594_s3 + $0x40] sm:$0xff]  ;;  %v876_v2 = vld [vmem:[%s1594_s3 + $0x38] sm:$0xff] }
  0x12   : > { %1165 = vmatprep.subr.mxu0 %v233_v3  ;;  %395 = vst.msk [vmem:[#allocation2 + $0x40] sm:$0xff] %vm386_vm2, %v1256_v12  ;;  %396 = vst.msk [vmem:[#allocation2 + $0x48] sm:$0xff] %vm386_vm2, %v1256_v12  ;;  %1212 = vmatprep.subr.mxu1 %v877_v0 }
  0x13   : > { %1166 = vmatpush3.msra.mxu0 %v233_v3  ;;  %397 = vst.msk [vmem:[#allocation2 + $0x50] sm:$0xff] %vm386_vm2, %v1256_v12  ;;  %398 = vst.msk [vmem:[#allocation2 + $0x58] sm:$0xff] %vm386_vm2, %v1256_v12  ;;  %1221 = vmatpush3.msra.mxu1 %v877_v0  ;;  %v875_v3 = vld [vmem:[%s1594_s3 + $0x30] sm:$0xff] }
  0x14   : > { %1168 = vmatmul.mubr.msk.f32.vlgmr.msra.gmra.mxu0 %vm244_vm1, %v226_v5  ;;  %399 = vst.msk [vmem:[#allocation2 + $0x60] sm:$0xff] %vm386_vm2, %v1256_v12  ;;  %1179 = vmatprep.subr.mxu0 %v877_v0  ;;  %v874_v5 = vld [vmem:[%s1594_s3 + $0x28] sm:$0xff]  ;;  %v871_v12 = vld [vmem:[%s1594_s3 + $0x10] sm:$0xff] }
  0x15   : > { %1170 = vmatprep.mubr.msk.f32.mxu0 %vm244_vm1, %v227_v6  ;;  %1180 = vmatpush3.msra.mxu0 %v877_v0  ;;  %v873_v6 = vld [vmem:[%s1594_s3 + $0x20] sm:$0xff] }
  0x16   : > { %v428_v13 = vld [vmem:[#allocation2 + $0x2] sm:$0xff]  ;;  %1213 = vmatprep.subr.mxu1 %v876_v2  ;;  %1181 = vmatprep.subr.mxu0 %v876_v2 }
  0x17   : > { %530 = vrot.lane.b32.xlu1 %v428_v13, %s1257_s7  ;;  %v418_v15 = vld [vmem:[#allocation2 + $0x1] sm:$0xff]  ;;  %1222 = vmatpush3.msra.mxu1 %v876_v2 }
  0x18   : > { %1171 = vmatmul.mubr.msk.f32.gmra.mxu0 %vm244_vm1, %v228_v7  ;;  %490 = vrot.lane.b32.xlu0 %v418_v15, %s1259_s9  ;;  %v870_v13 = vld [vmem:[%s1594_s3 + $0x8] sm:$0xff] }
  0x19   : > { %1173 = vmatprep.mubr.msk.f32.mxu0 %vm244_vm1, %v229_v8  ;;  %1182 = vmatpush3.msra.mxu0 %v876_v2 }
  0x1a   : > { %1214 = vmatprep.subr.mxu1 %v875_v3  ;;  %1183 = vmatprep.subr.mxu0 %v875_v3 }
  0x1b   : > { %v459_v14 = vld [vmem:[#allocation2 + $0x5c] sm:$0xff]  ;;  %1223 = vmatpush3.msra.mxu1 %v875_v3  ;;  %1184 = vmatpush3.msra.mxu0 %v875_v3 }
  0x1c   : > { %1174 = vmatmul.mubr.msk.f32.gmra.mxu0 %vm244_vm1, %v230_v9  ;;  %690 = vrot.lane.b32.xlu1 %v459_v14, %s1258_s8  ;;  %v469_v16 = vld [vmem:[#allocation2 + $0x5d] sm:$0xff] }
  0x1d   : > { %1176 = vmatprep.mubr.msk.f32.mxu0 %vm244_vm1, %v231_v10  ;;  %1215 = vmatprep.subr.mxu1 %v874_v5  ;;  %v872_v9 = vld [vmem:[%s1594_s3 + $0x18] sm:$0xff] }
  0x1e   : > { %1185 = vmatprep.subr.mxu0 %v874_v5  ;;  %1224 = vmatpush3.msra.mxu1 %v874_v5 }
  0x1f   : > { %1186 = vmatpush3.msra.mxu0 %v874_v5  ;;  %1216 = vmatprep.subr.mxu1 %v873_v6 }
  0x20   : > { %1177 = vmatmul.mubr.msk.f32.gmra.mxu0 %vm244_vm1, %v232_v11  ;;  %730 = vrot.lane.b32.xlu1 %v469_v16, %s1260_s10  ;;  %v869_v16 = vld [vmem:[%s1594_s3] sm:$0xff] }
  0x21   : > { %1187 = vmatprep.subr.mxu0 %v873_v6  ;;  %1225 = vmatpush3.msra.mxu1 %v873_v6 }
  0x22   : > { %1188 = vmatpush3.msra.mxu0 %v873_v6  ;;  %1217 = vmatprep.subr.mxu1 %v872_v9 }
  0x23   : > { %1189 = vmatprep.subr.mxu0 %v872_v9  ;;  %1226 = vmatpush3.msra.mxu1 %v872_v9 }
  0x24   : > { %1190 = vmatpush3.msra.mxu0 %v872_v9  ;;  %1218 = vmatprep.subr.mxu1 %v871_v12  ;;  %v479_v9 = vld [vmem:[#allocation2 + $0x5e] sm:$0xff] }
  0x25   : > { %1191 = vmatprep.subr.mxu0 %v871_v12  ;;  %1227 = vmatpush3.msra.mxu1 %v871_v12 }
  0x26   : > { %1192 = vmatpush3.msra.mxu0 %v871_v12  ;;  %1219 = vmatprep.subr.mxu1 %v870_v13 }
  0x27   : > { %1193 = vmatprep.subr.mxu0 %v870_v13  ;;  %1228 = vmatpush3.msra.mxu1 %v870_v13 }
  0x28   : > { %1194 = vmatpush3.msra.mxu0 %v870_v13  ;;  %1220 = vmatprep.subr.mxu1 %v869_v16 }
  0x29   : > { %1195 = vmatprep.subr.mxu0 %v869_v16  ;;  %1229 = vmatpush3.msra.mxu1 %v869_v16 }
  0x2a   : > { %1196 = vmatpush3.msra.mxu0 %v869_v16 }
  0xd4   : > { %v1169_v18 = vpop.f32.mrf.mxu0 }
  0xd5   : > { %v345_v19 = vadd.f32 %v1169_v18, %v1104_v17 }
  0xd6   : > { %v339_v20 = vpop.f32.mrf.mxu0 }
  0xd7   : > { %v379_v21 = vmax.f32 %v345_v19, 0.0  ;;  %v340_v22 = vadd.f32 %v1104_v17, %v339_v20 }
  0xd8   : > { %v1172_v23 = vpop.f32.mrf.mxu0 }
  0xd9   : > { %401 = vst.msk [vmem:[#allocation2 + $0x15] sm:$0xff] %vm386_vm2, %v379_v21  ;;  %v378_v24 = vmax.f32 %v340_v22, 0.0  ;;  %v355_v25 = vadd.f32 %v1172_v23, %v1104_v17 }
  0xda   : > { %v349_v26 = vpop.f32.mrf.mxu0 }
  0xdb   : > { %400 = vst.msk [vmem:[#allocation2 + $0xb] sm:$0xff] %vm386_vm2, %v378_v24  ;;  %v381_v27 = vmax.f32 %v355_v25, 0.0  ;;  %v350_v28 = vadd.f32 %v1104_v17, %v349_v26  ;;  %v1434_v24 = vpop.permute.xlu1 %530 }
  0xdc   : > { %v1175_v29 = vpop.f32.mrf.mxu0 }
  0xdd   : > { %403 = vst.msk [vmem:[#allocation2 + $0x29] sm:$0xff] %vm386_vm2, %v381_v27  ;;  %v380_v30 = vmax.f32 %v350_v28, 0.0  ;;  %v365_v31 = vadd.f32 %v1175_v29, %v1104_v17 }
  0xde   : > { %v359_v32 = vpop.f32.mrf.mxu0 }
  0xdf   : > { %402 = vst.msk [vmem:[#allocation2 + $0x1f] sm:$0xff] %vm386_vm2, %v380_v30  ;;  %v383_v33 = vmax.f32 %v365_v31, 0.0  ;;  %v360_v34 = vadd.f32 %v1104_v17, %v359_v32  ;;  %v1438_v27 = vpop.permute.xlu1 %690  ;;  %v491_v32 = vpop.permute.xlu0 %490 }
  0xe0   : > { %v450_v35 = vld [vmem:[#allocation2 + $0x14] sm:$0xff]  ;;  %v1178_v37 = vpop.f32.mrf.mxu0 }
  0xe1   : > { %v440_v36 = vld [vmem:[#allocation2 + $0x13] sm:$0xff]  ;;  %643 = vrot.lane.b32.xlu0 %v450_v35, %s1261_s13  ;;  %405 = vst.msk [vmem:[#allocation2 + $0x3d] sm:$0xff] %vm386_vm2, %v383_v33  ;;  %v382_v38 = vmax.f32 %v360_v34, 0.0  ;;  %v375_v39 = vadd.f32 %v1178_v37, %v1104_v17 }
  0xe2   : > { %603 = vrot.lane.b32.xlu1 %v440_v36, %s1262_s14  ;;  %v369_v40 = vpop.f32.mrf.mxu0  ;;  %v430_v43 = vld [vmem:[#allocation2 + $0x12] sm:$0xff]  ;;  %v419_v46 = vld [vmem:[#allocation2 + $0x9] sm:$0xff] }
  0xe3   : > { %404 = vst.msk [vmem:[#allocation2 + $0x33] sm:$0xff] %vm386_vm2, %v382_v38  ;;  %v385_v41 = vmax.f32 %v375_v39, 0.0  ;;  %v370_v42 = vadd.f32 %v1104_v17, %v369_v40  ;;  %v460_v45 = vld [vmem:[#allocation2 + $0x15] sm:$0xff]  ;;  %v429_v48 = vld [vmem:[#allocation2 + $0xa] sm:$0xff]  ;;  %v1444_v33 = vpop.permute.xlu1 %730 }
  0xe4   : > { %v470_v47 = vld [vmem:[#allocation2 + $0x16] sm:$0xff]  ;;  %v423_v50 = vld [vmem:[#allocation2 + $0x29] sm:$0xff] }
  0xe5   : > { %672 = vrot.lane.b32.xlu0 %v450_v35, %s1258_s8  ;;  %407 = vst.msk [vmem:[#allocation2 + $0x51] sm:$0xff] %vm386_vm2, %v385_v41  ;;  %v384_v44 = vmax.f32 %v370_v42, 0.0  ;;  %v420_v49 = vld [vmem:[#allocation2 + $0x11] sm:$0xff] }
  0xe6   : > { %534 = vrot.lane.b32.xlu1 %v430_v43, %s1257_s7  ;;  %v433_v51 = vld [vmem:[#allocation2 + $0x2a] sm:$0xff]  ;;  %v421_v53 = vld [vmem:[#allocation2 + $0x19] sm:$0xff]  ;;  %v432_v60 = vld [vmem:[#allocation2 + $0x22] sm:$0xff] }
  0xe7   : > { %406 = vst.msk [vmem:[#allocation2 + $0x47] sm:$0xff] %vm386_vm2, %v384_v44  ;;  %v439_v52 = vld [vmem:[#allocation2 + $0xb] sm:$0xff]  ;;  %v431_v55 = vld [vmem:[#allocation2 + $0x1a] sm:$0xff]  ;;  %v442_v58 = vld [vmem:[#allocation2 + $0x23] sm:$0xff] }
  0xe8   : > { %v449_v54 = vld [vmem:[#allocation2 + $0xc] sm:$0xff]  ;;  %v441_v56 = vld [vmem:[#allocation2 + $0x1b] sm:$0xff]  ;;  %v452_v59 = vld [vmem:[#allocation2 + $0x24] sm:$0xff] }
  0xe9   : > { %712 = vrot.lane.b32.xlu0 %v460_v45, %s1260_s10  ;;  %v443_v57 = vld [vmem:[#allocation2 + $0x2b] sm:$0xff]  ;;  %v451_v61 = vld [vmem:[#allocation2 + $0x1c] sm:$0xff] }
  0xea   : > { %492 = vrot.lane.b32.xlu1 %v419_v46, %s1259_s9  ;;  %v422_v62 = vld [vmem:[#allocation2 + $0x21] sm:$0xff]  ;;  %v453_v10 = vld [vmem:[#allocation2 + $0x2c] sm:$0xff]  ;;  %v425_v21 = vld [vmem:[#allocation2 + $0x39] sm:$0xff] }
  0xeb   : > { %v461_v63 = vld [vmem:[#allocation2 + $0x1d] sm:$0xff]  ;;  %v462_v8 = vld [vmem:[#allocation2 + $0x25] sm:$0xff]  ;;  %v434_v14 = vld [vmem:[#allocation2 + $0x32] sm:$0xff] }
  0xec   : > { %v455_v1 = vld [vmem:[#allocation2 + $0x3c] sm:$0xff]  ;;  %v472_v11 = vld [vmem:[#allocation2 + $0x26] sm:$0xff]  ;;  %v424_v18 = vld [vmem:[#allocation2 + $0x31] sm:$0xff] }
  0xed   : > { %752 = vrot.lane.b32.xlu0 %v470_v47, %s1263_s15  ;;  %v465_v4 = vld [vmem:[#allocation2 + $0x3d] sm:$0xff]  ;;  %v463_v17 = vld [vmem:[#allocation2 + $0x2d] sm:$0xff]  ;;  %v464_v26 = vld [vmem:[#allocation2 + $0x35] sm:$0xff] }
  0xee   : > { %532 = vrot.lane.b32.xlu1 %v429_v48, %s1257_s7  ;;  %v475_v7 = vld [vmem:[#allocation2 + $0x3e] sm:$0xff]  ;;  %v444_v19 = vld [vmem:[#allocation2 + $0x33] sm:$0xff]  ;;  %v427_v37 = vld [vmem:[#allocation2 + $0x49] sm:$0xff] }
  0xef   : > { %v445_v15 = vld [vmem:[#allocation2 + $0x3b] sm:$0xff]  ;;  %v473_v20 = vld [vmem:[#allocation2 + $0x2e] sm:$0xff]  ;;  %v446_v34 = vld [vmem:[#allocation2 + $0x43] sm:$0xff] }
  0xf0   : > { %v454_v22 = vld [vmem:[#allocation2 + $0x34] sm:$0xff]  ;;  %v436_v30 = vld [vmem:[#allocation2 + $0x42] sm:$0xff]  ;;  %v447_v5 = vld [vmem:[#allocation2 + $0x4b] sm:$0xff] }
  0xf1   : > { %494 = vrot.lane.b32.xlu0 %v420_v49, %s1259_s9  ;;  %v435_v23 = vld [vmem:[#allocation2 + $0x3a] sm:$0xff]  ;;  %v438_v25 = vld [vmem:[#allocation2 + $0x52] sm:$0xff]  ;;  %v456_v44 = vld [vmem:[#allocation2 + $0x44] sm:$0xff] }
  0xf2   : > { %561 = vrot.lane.b32.xlu1 %v429_v48, %s1264_s16  ;;  %v448_v28 = vld [vmem:[#allocation2 + $0x53] sm:$0xff]  ;;  %v426_v45 = vld [vmem:[#allocation2 + $0x41] sm:$0xff] }
  0xf3   : > { %v474_v29 = vld [vmem:[#allocation2 + $0x36] sm:$0xff]  ;;  %v409_v46 = vld [vmem:[#allocation2 + $0x8] sm:$0xff] }
  0xf4   : > { %v458_v31 = vld [vmem:[#allocation2 + $0x54] sm:$0xff] }
  0xf5   : > { %500 = vrot.lane.b32.xlu0 %v423_v50, %s1259_s9  ;;  %v468_v38 = vld [vmem:[#allocation2 + $0x55] sm:$0xff] }
  0xf6   : > { %563 = vrot.lane.b32.xlu1 %v430_v43, %s1264_s16  ;;  %v478_v41 = vld [vmem:[#allocation2 + $0x56] sm:$0xff]  ;;  %v477_v6 = vld [vmem:[#allocation2 + $0x4e] sm:$0xff] }
  0xf9   : > { %540 = vrot.lane.b32.xlu0 %v433_v51, %s1257_s7 }
  0xfa   : > { %601 = vrot.lane.b32.xlu1 %v439_v52, %s1262_s14 }
  0xfd   : > { %496 = vrot.lane.b32.xlu0 %v421_v53, %s1259_s9 }
  0xfe   : > { %641 = vrot.lane.b32.xlu1 %v449_v54, %s1261_s13  ;;  %v457_v54 = vld [vmem:[#allocation2 + $0x4c] sm:$0xff] }
 0x101   : > { %565 = vrot.lane.b32.xlu0 %v431_v55, %s1264_s16 }
 0x102   : > { %569 = vrot.lane.b32.xlu1 %v433_v51, %s1264_s16  ;;  %v437_v51 = vld [vmem:[#allocation2 + $0x4a] sm:$0xff] }
 0x105   : > { %605 = vrot.lane.b32.xlu0 %v441_v56, %s1262_s14 }
 0x106   : > { %609 = vrot.lane.b32.xlu1 %v443_v57, %s1262_s14 }
 0x109   : > { %607 = vrot.lane.b32.xlu0 %v442_v58, %s1262_s14 }
 0x10a   : > { %536 = vrot.lane.b32.xlu1 %v431_v55, %s1257_s7  ;;  %v408_v55 = vld [vmem:[#allocation2] sm:$0xff] }
 0x10d   : > { %647 = vrot.lane.b32.xlu0 %v452_v59, %s1261_s13 }
 0x10e   : > { %567 = vrot.lane.b32.xlu1 %v432_v60, %s1264_s16 }
 0x111   : > { %674 = vrot.lane.b32.xlu0 %v451_v61, %s1258_s8 }
 0x112   : > { %498 = vrot.lane.b32.xlu1 %v422_v62, %s1259_s9  ;;  %v782_v62 = vsel %vm386_vm2, %v408_v55, %v491_v32 }
 0x115   : > { %714 = vrot.lane.b32.xlu0 %v461_v63, %s1260_s10  ;;  %v413_v63 = vld [vmem:[#allocation2 + $0x28] sm:$0xff] }
 0x116   : > { %645 = vrot.lane.b32.xlu1 %v451_v61, %s1261_s13 }
 0x119   : > { %682 = vrot.lane.b32.xlu0 %v455_v1, %s1258_s8 }
 0x11a   : > { %538 = vrot.lane.b32.xlu1 %v432_v60, %s1257_s7  ;;  %v467_v60 = vld [vmem:[#allocation2 + $0x4d] sm:$0xff] }
 0x11d   : > { %722 = vrot.lane.b32.xlu0 %v465_v4, %s1260_s10 }
 0x11e   : > { %676 = vrot.lane.b32.xlu1 %v452_v59, %s1258_s8  ;;  %v466_v59 = vld [vmem:[#allocation2 + $0x45] sm:$0xff] }
 0x121   : > { %762 = vrot.lane.b32.xlu0 %v475_v7, %s1263_s15  ;;  %v793_v7 = vsel %vm792_vm3, %v782_v62, %v1434_v24 }
 0x122   : > { %716 = vrot.lane.b32.xlu1 %v462_v8, %s1260_s10 }
 0x125   : > { %678 = vrot.lane.b32.xlu0 %v453_v10, %s1258_s8 }
 0x126   : > { %756 = vrot.lane.b32.xlu1 %v472_v11, %s1263_s15 }
 0x129   : > { %571 = vrot.lane.b32.xlu0 %v434_v14, %s1264_s16 }
 0x12a   : > { %613 = vrot.lane.b32.xlu1 %v445_v15, %s1262_s14 }
 0x12d   : > { %718 = vrot.lane.b32.xlu0 %v463_v17, %s1260_s10 }
 0x12e   : > { %653 = vrot.lane.b32.xlu1 %v455_v1, %s1261_s13 }
 0x131   : > { %502 = vrot.lane.b32.xlu0 %v424_v18, %s1259_s9 }
 0x132   : > { %611 = vrot.lane.b32.xlu1 %v444_v19, %s1262_s14 }
 0x135   : > { %649 = vrot.lane.b32.xlu0 %v453_v10, %s1261_s13 }
 0x136   : > { %758 = vrot.lane.b32.xlu1 %v473_v20, %s1263_s15 }
 0x139   : > { %504 = vrot.lane.b32.xlu0 %v425_v21, %s1259_s9 }
 0x13a   : > { %542 = vrot.lane.b32.xlu1 %v434_v14, %s1257_s7  ;;  %v476_v14 = vld [vmem:[#allocation2 + $0x46] sm:$0xff] }
 0x13d   : > { %651 = vrot.lane.b32.xlu0 %v454_v22, %s1261_s13 }
 0x13e   : > { %680 = vrot.lane.b32.xlu1 %v454_v22, %s1258_s8  ;;  %v471_v22 = vld [vmem:[#allocation2 + $0x1e] sm:$0xff] }
 0x141   : > { %544 = vrot.lane.b32.xlu0 %v435_v23, %s1257_s7 }
 0x142   : > { %573 = vrot.lane.b32.xlu1 %v435_v23, %s1264_s16 }
 0x145   : > { %579 = vrot.lane.b32.xlu0 %v438_v25, %s1264_s16 }
 0x146   : > { %720 = vrot.lane.b32.xlu1 %v464_v26, %s1260_s10 }
 0x149   : > { %619 = vrot.lane.b32.xlu0 %v448_v28, %s1262_s14 }
 0x14a   : > { %760 = vrot.lane.b32.xlu1 %v474_v29, %s1263_s15 }
 0x14d   : > { %575 = vrot.lane.b32.xlu0 %v436_v30, %s1264_s16 }
 0x14e   : > { %659 = vrot.lane.b32.xlu1 %v458_v31, %s1261_s13 }
 0x151   : > { %615 = vrot.lane.b32.xlu0 %v446_v34, %s1262_s14 }
 0x152   : > { %688 = vrot.lane.b32.xlu1 %v458_v31, %s1258_s8 }
 0x153   : > { %v644_v35 = vpop.permute.xlu0 %643 }
 0x154   : > { %v604_v36 = vpop.permute.xlu1 %603 }
 0x155   : > { %508 = vrot.lane.b32.xlu0 %v427_v37, %s1259_s9 }
 0x156   : > { %728 = vrot.lane.b32.xlu1 %v468_v38, %s1260_s10 }
 0x157   : > { %v673_v39 = vpop.permute.xlu0 %672 }
 0x158   : > { %v1450_v40 = vpop.permute.xlu1 %534 }
 0x159   : > { %546 = vrot.lane.b32.xlu0 %v436_v30, %s1257_s7 }
 0x15a   : > { %768 = vrot.lane.b32.xlu1 %v478_v41, %s1263_s15 }
 0x15b   : > { %v713_v42 = vpop.permute.xlu0 %712 }
 0x15c   : > { %v493_v43 = vpop.permute.xlu1 %492 }
 0x15d   : > { %684 = vrot.lane.b32.xlu0 %v456_v44, %s1258_s8  ;;  %v783_v47 = vsel %vm386_vm2, %v409_v46, %v493_v43 }
 0x15e   : > { %506 = vrot.lane.b32.xlu1 %v426_v45, %s1259_s9 }
 0x15f   : > { %v753_v48 = vpop.permute.xlu0 %752 }
 0x160   : > { %v533_v49 = vpop.permute.xlu1 %532 }
 0x161   : > { %v794_v50 = vsel %vm792_vm3, %v783_v47, %v533_v49  ;;  %548 = vrot.lane.b32.xlu0 %v437_v51, %s1257_s7  ;;  %s1230_s7 = smul.u32 80, %s1598_s19 }
 0x162   : > { %655 = vrot.lane.b32.xlu1 %v456_v44, %s1261_s13 }
 0x163   : > { %v1460_v52 = vpop.permute.xlu0 %494 }
 0x164   : > { %v562_v53 = vpop.permute.xlu1 %561 }
 0x165   : > { %577 = vrot.lane.b32.xlu0 %v437_v51, %s1264_s16  ;;  %v804_v8 = vsel %vm803_vm5, %v793_v7, %v562_v53 }
 0x166   : > { %686 = vrot.lane.b32.xlu1 %v457_v54, %s1258_s8 }
 0x167   : > { %v501_v56 = vpop.permute.xlu0 %500 }
 0x168   : > { %v564_v57 = vpop.permute.xlu1 %563  ;;  %v787_v1 = vsel %vm386_vm2, %v413_v63, %v501_v56 }
 0x169   : > { %v805_v58 = vsel %vm803_vm5, %v794_v50, %v564_v57  ;;  %724 = vrot.lane.b32.xlu0 %v466_v59, %s1260_s10  ;;  %v411_v59 = vld [vmem:[#allocation2 + $0x18] sm:$0xff] }
 0x16a   : > { %v816_v61 = vsel %vm814_vm4, %v805_v58, %v604_v36  ;;  %726 = vrot.lane.b32.xlu1 %v467_v60, %s1260_s10 }
 0x16b   : > { %v827_v0 = vsel %vm825_vm6, %v816_v61, %v644_v35  ;;  %v541_v2 = vpop.permute.xlu0 %540  ;;  %v412_v35 = vld [vmem:[#allocation2 + $0x20] sm:$0xff] }
 0x16c   : > { %v602_v3 = vpop.permute.xlu1 %601  ;;  %v1472_v4 = vsel %vm792_vm3, %v787_v1, %v541_v2 }
 0x16d   : > { %617 = vrot.lane.b32.xlu0 %v447_v5, %s1262_s14  ;;  %v815_v10 = vsel %vm814_vm4, %v804_v8, %v602_v3  ;;  %s224_s14 = scalar_lea.vmem %s1596_s5, %s1230_s7 }
 0x16e   : > { %766 = vrot.lane.b32.xlu1 %v477_v6, %s1263_s15 }
 0x16f   : > { %v497_v11 = vpop.permute.xlu0 %496 }
 0x170   : > { %v642_v12 = vpop.permute.xlu1 %641  ;;  %v785_v60 = vsel %vm386_vm2, %v411_v59, %v497_v11 }
 0x171   : > { %v826_v13 = vsel %vm825_vm6, %v815_v10, %v642_v12  ;;  %764 = vrot.lane.b32.xlu0 %v476_v14, %s1263_s15 }
 0x172   : > { %v837_v15 = vsel %vm836_vm7, %v826_v13, %v673_v39  ;;  %770 = vrot.lane.b32.xlu1 %v479_v9, %s1263_s15 }
 0x173   : > { %v848_v16 = vsel %vm847_vm8, %v837_v15, %v713_v42  ;;  %v566_v17 = vpop.permute.xlu0 %565  ;;  %v410_v42 = vld [vmem:[#allocation2 + $0x10] sm:$0xff] }
 0x174   : > { %v570_v18 = vpop.permute.xlu1 %569  ;;  %v859_v19 = vsel %vm858_vm9, %v848_v16, %v753_v48  ;;  %v784_v44 = vsel %vm386_vm2, %v410_v42, %v1460_v52  ;;  %v414_v15 = vld [vmem:[#allocation2 + $0x30] sm:$0xff] }
 0x175   : > { %1197 = vmatprep.mubr.msk.f32.mxu0 %vm885_vm10, %v859_v19  ;;  %657 = vrot.lane.b32.xlu0 %v457_v54, %s1261_s13  ;;  %v795_v47 = vsel %vm792_vm3, %v784_v44, %v1450_v40 }
 0x176   : > { %v806_v48 = vsel %vm803_vm5, %v795_v47, %v566_v17 }
 0x177   : > { %v606_v20 = vpop.permute.xlu0 %605 }
 0x178   : > { %v610_v21 = vpop.permute.xlu1 %609  ;;  %v817_v51 = vsel %vm814_vm4, %v806_v48, %v606_v20 }
 0x179   : > { %754 = vrot.lane.b32.xlu0 %v471_v22, %s1263_s15 }
 0x17b   : > { %v608_v23 = vpop.permute.xlu0 %607 }
 0x17c   : > { %v537_v24 = vpop.permute.xlu1 %536 }
 0x17d   : > { %v796_v61 = vsel %vm792_vm3, %v785_v60, %v537_v24 }
 0x17f   : > { %v648_v25 = vpop.permute.xlu0 %647 }
 0x180   : > { %v568_v26 = vpop.permute.xlu1 %567 }
 0x181   : > { %v807_v62 = vsel %vm803_vm5, %v796_v61, %v568_v26 }
 0x182   : > { %v818_v1 = vsel %vm814_vm4, %v807_v62, %v608_v23 }
 0x183   : > { %v675_v28 = vpop.permute.xlu0 %674  ;;  %v829_v5 = vsel %vm825_vm6, %v818_v1, %v648_v25  ;;  %v416_v1 = vld [vmem:[#allocation2 + $0x40] sm:$0xff] }
 0x184   : > { %v499_v29 = vpop.permute.xlu1 %498  ;;  %v838_v30 = vsel %vm836_vm7, %v827_v0, %v675_v28 }
 0x185   : > { %v786_v36 = vsel %vm386_vm2, %v412_v35, %v499_v29 }
 0x187   : > { %v715_v31 = vpop.permute.xlu0 %714 }
 0x188   : > { %v646_v32 = vpop.permute.xlu1 %645  ;;  %v1491_v34 = vsel %vm847_vm8, %v838_v30, %v715_v31 }
 0x189   : > { %v828_v53 = vsel %vm825_vm6, %v817_v51, %v646_v32 }
 0x18b   : > { %v683_v37 = vpop.permute.xlu0 %682 }
 0x18c   : > { %v539_v38 = vpop.permute.xlu1 %538 }
 0x18d   : > { %v797_v39 = vsel %vm792_vm3, %v786_v36, %v539_v38 }
 0x18e   : > { %v808_v41 = vsel %vm803_vm5, %v797_v39, %v570_v18 }
 0x18f   : > { %v819_v43 = vsel %vm814_vm4, %v808_v41, %v610_v21  ;;  %v723_v45 = vpop.permute.xlu0 %722 }
 0x190   : > { %v677_v46 = vpop.permute.xlu1 %676 }
 0x191   : > { %v839_v54 = vsel %vm836_vm7, %v828_v53, %v677_v46 }
 0x193   : > { %v763_v49 = vpop.permute.xlu0 %762 }
 0x194   : > { %v717_v50 = vpop.permute.xlu1 %716 }
 0x195   : > { %v850_v55 = vsel %vm847_vm8, %v839_v54, %v717_v50 }
 0x197   : > { %v679_v56 = vpop.permute.xlu0 %678 }
 0x198   : > { %v757_v57 = vpop.permute.xlu1 %756  ;;  %v840_v6 = vsel %vm836_vm7, %v829_v5, %v679_v56  ;;  %v417_v56 = vld [vmem:[#allocation2 + $0x48] sm:$0xff] }
 0x199   : > { %v861_v52 = vsel %vm858_vm9, %v850_v55, %v757_v57 }
 0x19a   : > { %1200 = vmatprep.mubr.msk.f32.mxu1 %vm885_vm10, %v861_v52 }
 0x19b   : > { %v572_v58 = vpop.permute.xlu0 %571 }
 0x19c   : > { %v614_v40 = vpop.permute.xlu1 %613  ;;  %v809_v16 = vsel %vm803_vm5, %v1472_v4, %v572_v58 }
 0x19f   : > { %v719_v63 = vpop.permute.xlu0 %718 }
 0x1a0   : > { %v654_v0 = vpop.permute.xlu1 %653  ;;  %v851_v7 = vsel %vm847_vm8, %v840_v6, %v719_v63 }
 0x1a3   : > { %v503_v2 = vpop.permute.xlu0 %502 }
 0x1a4   : > { %v612_v3 = vpop.permute.xlu1 %611  ;;  %v788_v17 = vsel %vm386_vm2, %v414_v15, %v503_v2 }
 0x1a5   : > { %v820_v18 = vsel %vm814_vm4, %v809_v16, %v612_v3 }
 0x1a7   : > { %v650_v8 = vpop.permute.xlu0 %649 }
 0x1a8   : > { %v759_v9 = vpop.permute.xlu1 %758  ;;  %v830_v29 = vsel %vm825_vm6, %v819_v43, %v650_v8 }
 0x1a9   : > { %v862_v10 = vsel %vm858_vm9, %v851_v7, %v759_v9 }
 0x1aa   : > { %1201 = vmatmul.mubr.msk.f32.vlgmr.msra.gmra.mxu1 %vm885_vm10, %v862_v10 }
 0x1ab   : > { %v505_v11 = vpop.permute.xlu0 %504 }
 0x1ac   : > { %v543_v12 = vpop.permute.xlu1 %542 }
 0x1ad   : > { %v799_v19 = vsel %vm792_vm3, %v788_v17, %v543_v12 }
 0x1af   : > { %v652_v13 = vpop.permute.xlu0 %651 }
 0x1b0   : > { %v681_v14 = vpop.permute.xlu1 %680  ;;  %v831_v22 = vsel %vm825_vm6, %v820_v18, %v652_v13 }
 0x1b1   : > { %v842_v26 = vsel %vm836_vm7, %v831_v22, %v683_v37  ;;  %v841_v30 = vsel %vm836_vm7, %v830_v29, %v681_v14 }
 0x1b2   : > { %v853_v31 = vsel %vm847_vm8, %v842_v26, %v723_v45 }
 0x1b3   : > { %v545_v20 = vpop.permute.xlu0 %544  ;;  %v864_v39 = vsel %vm858_vm9, %v853_v31, %v763_v49 }
 0x1b4   : > { %v574_v21 = vpop.permute.xlu1 %573 }
 0x1b5   : > { %v810_v23 = vsel %vm803_vm5, %v799_v19, %v574_v21 }
 0x1b6   : > { %v821_v24 = vsel %vm814_vm4, %v810_v23, %v614_v40  ;;  %v415_v40 = vld [vmem:[#allocation2 + $0x38] sm:$0xff] }
 0x1b7   : > { %v832_v25 = vsel %vm825_vm6, %v821_v24, %v654_v0  ;;  %v580_v28 = vpop.permute.xlu0 %579  ;;  %v789_v59 = vsel %vm386_vm2, %v415_v40, %v505_v11 }
 0x1b8   : > { %v721_v4 = vpop.permute.xlu1 %720  ;;  %v800_v60 = vsel %vm792_vm3, %v789_v59, %v545_v20 }
 0x1b9   : > { %v852_v32 = vsel %vm847_vm8, %v841_v30, %v721_v4 }
 0x1bb   : > { %v620_v35 = vpop.permute.xlu0 %619 }
 0x1bc   : > { %v761_v36 = vpop.permute.xlu1 %760 }
 0x1bd   : > { %v863_v38 = vsel %vm858_vm9, %v852_v32, %v761_v36 }
 0x1be   : > { %1203 = vmatprep.mubr.msk.f32.mxu1 %vm885_vm10, %v863_v38 }
 0x1bf   : > { %1204 = vmatmul.mubr.msk.f32.gmra.mxu1 %vm885_vm10, %v864_v39  ;;  %v576_v37 = vpop.permute.xlu0 %575 }
 0x1c0   : > { %v660_v41 = vpop.permute.xlu1 %659  ;;  %v811_v63 = vsel %vm803_vm5, %v800_v60, %v576_v37 }
 0x1c3   : > { %v616_v42 = vpop.permute.xlu0 %615 }
 0x1c4   : > { %v689_v43 = vpop.permute.xlu1 %688  ;;  %v822_v0 = vsel %vm814_vm4, %v811_v63, %v616_v42 }
 0x1c7   : > { %v509_v44 = vpop.permute.xlu0 %508 }
 0x1c8   : > { %v729_v46 = vpop.permute.xlu1 %728  ;;  %v791_v57 = vsel %vm386_vm2, %v417_v56, %v509_v44 }
 0x1cb   : > { %v547_v47 = vpop.permute.xlu0 %546 }
 0x1cc   : > { %v769_v45 = vpop.permute.xlu1 %768 }
 0x1cf   : > { %v685_v48 = vpop.permute.xlu0 %684 }
 0x1d0   : > { %v507_v50 = vpop.permute.xlu1 %506  ;;  %v843_v2 = vsel %vm836_vm7, %v832_v25, %v685_v48 }
 0x1d1   : > { %v790_v3 = vsel %vm386_vm2, %v416_v1, %v507_v50 }
 0x1d2   : > { %v801_v13 = vsel %vm792_vm3, %v790_v3, %v547_v47 }
 0x1d3   : > { %v549_v51 = vpop.permute.xlu0 %548 }
 0x1d4   : > { %v656_v53 = vpop.permute.xlu1 %655  ;;  %v802_v52 = vsel %vm792_vm3, %v791_v57, %v549_v51 }
 0x1d5   : > { %v813_v61 = vsel %vm803_vm5, %v802_v52, %v580_v28  ;;  %v833_v6 = vsel %vm825_vm6, %v822_v0, %v656_v53 }
 0x1d6   : > { %v824_v5 = vsel %vm814_vm4, %v813_v61, %v620_v35 }
 0x1d7   : > { %v578_v54 = vpop.permute.xlu0 %577  ;;  %v835_v15 = vsel %vm825_vm6, %v824_v5, %v660_v41 }
 0x1d8   : > { %v687_v55 = vpop.permute.xlu1 %686  ;;  %v812_v16 = vsel %vm803_vm5, %v801_v13, %v578_v54  ;;  %v846_v19 = vsel %vm836_vm7, %v835_v15, %v1438_v27  ;;  %v1114_v27 = vld [vmem:[%s1595_s4] ss:$0 sm:$0xff] }
 0x1d9   : > { %v844_v8 = vsel %vm836_vm7, %v833_v6, %v687_v55  ;;  %v857_v24 = vsel %vm847_vm8, %v846_v19, %v1444_v33 }
 0x1db   : > { %v725_v49 = vpop.permute.xlu0 %724 }
 0x1dc   : > { %v727_v58 = vpop.permute.xlu1 %726  ;;  %v854_v9 = vsel %vm847_vm8, %v843_v2, %v725_v49 }
 0x1dd   : > { %v855_v11 = vsel %vm847_vm8, %v844_v8, %v727_v58 }
 0x1df   : > { %v618_v62 = vpop.permute.xlu0 %617 }
 0x1e0   : > { %v767_v7 = vpop.permute.xlu1 %766  ;;  %v823_v17 = vsel %vm814_vm4, %v812_v16, %v618_v62 }
 0x1e1   : > { %v866_v14 = vsel %vm858_vm9, %v855_v11, %v767_v7 }
 0x1e3   : > { %v765_v10 = vpop.permute.xlu0 %764 }
 0x1e4   : > { %v865_v12 = vsel %vm858_vm9, %v854_v9, %v765_v10  ;;  %v771_v21 = vpop.permute.xlu1 %770 }
 0x1e5   : > { %1206 = vmatprep.mubr.msk.f32.mxu1 %vm885_vm10, %v865_v12  ;;  %v868_v28 = vsel %vm858_vm9, %v857_v24, %v771_v21 }
 0x1e6   : > { %1207 = vmatmul.mubr.msk.f32.gmra.mxu1 %vm885_vm10, %v866_v14 }
 0x1e7   : > { %v658_v18 = vpop.permute.xlu0 %657 }
 0x1e8   : > { %v834_v20 = vsel %vm825_vm6, %v823_v17, %v658_v18 }
 0x1e9   : > { %v845_v22 = vsel %vm836_vm7, %v834_v20, %v689_v43 }
 0x1ea   : > { %v856_v23 = vsel %vm847_vm8, %v845_v22, %v729_v46 }
 0x1eb   : > { %v755_v25 = vpop.permute.xlu0 %754  ;;  %v867_v26 = vsel %vm858_vm9, %v856_v23, %v769_v45 }
 0x1ec   : > { %v860_v4 = vsel %vm858_vm9, %v1491_v34, %v755_v25  ;;  %1209 = vmatprep.mubr.msk.f32.mxu1 %vm885_vm10, %v867_v26 }
 0x1ed   : > { %1198 = vmatmul.mubr.msk.f32.vlgmr.msra.gmra.mxu0 %vm885_vm10, %v860_v4  ;;  %1210 = vmatmul.mubr.msk.f32.gmra.mxu1 %vm885_vm10, %v868_v28 }
 0x26a   : > { %v1202_v33 = vpop.f32.mrf.mxu1 }
 0x26b   : > { %v998_v29 = vadd.f32 %v1202_v33, %v1114_v27 }
 0x26c   : > { %v992_v30 = vpop.f32.mrf.mxu1 }
 0x26d   : > { %1034 = vst.msk [vmem:[%s224_s14 + $0x18] sm:$0xff] %vm792_vm3, %v998_v29  ;;  %v993_v34 = vadd.f32 %v1114_v27, %v992_v30 }
 0x26f   : > { %1033 = vst.msk [vmem:[%s224_s14 + $0x10] sm:$0xff] %vm792_vm3, %v993_v34 }
 0x27f   : > { %v1205_v31 = vpop.f32.mrf.mxu1 }
 0x280   : > { %v1008_v32 = vadd.f32 %v1205_v31, %v1114_v27 }
 0x281   : > { %v1002_v35 = vpop.f32.mrf.mxu1 }
 0x282   : > { %1036 = vst.msk [vmem:[%s224_s14 + $0x28] sm:$0xff] %vm792_vm3, %v1008_v32  ;;  %v1003_v36 = vadd.f32 %v1114_v27, %v1002_v35 }
 0x284   : > { %1035 = vst.msk [vmem:[%s224_s14 + $0x20] sm:$0xff] %vm792_vm3, %v1003_v36 }
 0x2a6   : > { %v1208_v38 = vpop.f32.mrf.mxu1 }
 0x2a7   : > { %v1018_v39 = vadd.f32 %v1208_v38, %v1114_v27 }
 0x2a8   : > { %v1012_v37 = vpop.f32.mrf.mxu1 }
 0x2a9   : > { %1038 = vst.msk [vmem:[%s224_s14 + $0x38] sm:$0xff] %vm792_vm3, %v1018_v39  ;;  %v1013_v41 = vadd.f32 %v1114_v27, %v1012_v37 }
 0x2ab   : > { %1037 = vst.msk [vmem:[%s224_s14 + $0x30] sm:$0xff] %vm792_vm3, %v1013_v41 }
 0x2ad   : > { %v1199_v42 = vpop.f32.mrf.mxu0  ;;  %v1211_v43 = vpop.f32.mrf.mxu1 }
 0x2ae   : > { %v988_v44 = vadd.f32 %v1199_v42, %v1114_v27  ;;  %v1028_v46 = vadd.f32 %v1211_v43, %v1114_v27 }
 0x2af   : > { %v982_v47 = vpop.f32.mrf.mxu0  ;;  %v1022_v45 = vpop.f32.mrf.mxu1 }
 0x2b0   : > { %1032 = vst.msk [vmem:[%s224_s14 + $0x8] sm:$0xff] %vm792_vm3, %v988_v44  ;;  %1040 = vst.msk [vmem:[%s224_s14 + $0x48] sm:$0xff] %vm792_vm3, %v1028_v46  ;;  %v983_v48 = vadd.f32 %v1114_v27, %v982_v47  ;;  %v1023_v50 = vadd.f32 %v1114_v27, %v1022_v45 }
 0x2b2   : > { %1031 = vst.msk [vmem:[%s224_s14] sm:$0xff] %vm792_vm3, %v983_v48  ;;  %1039 = vst.msk [vmem:[%s224_s14 + $0x40] sm:$0xff] %vm792_vm3, %v1023_v50 }
 0x2b3 PF: > { %s15_s18 = sadd.s32 1, %s1254_s18  }
 0x2b4   : > { %p12_p4 = scmp.ge.s32.totalorder %s15_s18, 4  }
 0x2b6   :  { %14 = sbr.rel (!%p12_p4) target bundleno = 1 (0x1), region = 70 }

</bundles_post_ra>
